<compile_context>
chip_gen: v5e
topology: v5e:2x2
jax: 0.10.0
libtpu: 0.0.40
codegen_flags: <defaults>
</compile_context>

<pallas_src>
import functools

import jax
import jax.numpy as jnp
from jax.experimental import pallas as pl
from jax.experimental.pallas import tpu as pltpu

BN_EPS = 1e-5
_LANE = 128


def _round_up(v, m):
    return (v + m - 1) // m * m


def _mxu_align(v):
    # >=128 lanes; once the real extent exceeds 128, pad to 256 so each vmatmul
    # feeds the full 256x256 MXU on v6e/v7x (128 is optimal for v5e's 128x128
    # MXU and minimizes padded HBM traffic for small channel counts).
    return _round_up(v, _LANE) if v <= _LANE else _round_up(v, 2 * _LANE)


def _sublane_multiple(dtype):
    # Rows packed per sublane group: f32 -> 8, bf16 -> 16, int8/fp8 -> 32.
    return 8 * max(1, 4 // jnp.dtype(dtype).itemsize)


def _matmul_stats_kernel(p_ref, w_ref, y_ref, sum_ref, sq_ref, acc_ref):
    """Pass 1: accumulate a (t_sp, Cout_p) tile over kd blocks in f32 scratch;
    on the last kd block, store the tile (bf16) and fold it into the per-image
    channel sum / sum-of-squares accumulators."""
    j = pl.program_id(1)            # spatial block (arbitrary)
    k = pl.program_id(2)            # contraction block (arbitrary, innermost)
    nk = pl.num_programs(2)

    @pl.when(k == 0)
    def _zero_acc():
        acc_ref[...] = jnp.zeros_like(acc_ref)

    @pl.when(jnp.logical_and(j == 0, k == 0))
    def _zero_stats():
        sum_ref[...] = jnp.zeros_like(sum_ref)
        sq_ref[...] = jnp.zeros_like(sq_ref)

    acc_ref[...] += jnp.dot(p_ref[0], w_ref[...],
                            preferred_element_type=jnp.float32)

    @pl.when(k == nk - 1)
    def _finalize():
        y = acc_ref[...]                                    # (t_sp, cout_p) f32
        y_ref[0] = y.astype(y_ref.dtype)                    # bf16 intermediate
        sum_ref[...] += jnp.sum(y, axis=0, keepdims=True)[None]
        sq_ref[...] += jnp.sum(y * y, axis=0, keepdims=True)[None]


def _bn_relu_t_kernel(y_ref, scale_ref, shift_ref, o_ref, *, use_relu):
    """Pass 2: y_hat = y*scale + shift (+ReLU), written channel-major so the
    wrapper needs no NHWC->NCHW transpose afterwards."""
    y = y_ref[0].astype(jnp.float32)                        # (t_sp, cout_p)
    z = y * scale_ref[...] + shift_ref[...]
    if use_relu:
        z = jnp.maximum(z, 0.0)
    o_ref[0] = z.T.astype(o_ref.dtype)                      # (cout_p, t_sp), XLU


def _im2col(x, kernel_size, stride, padding, dilation):
    """x: (N, Cin, H, W) -> per-image patch matrix (N, OH*OW, Cin*K*K) + (OH, OW)."""
    n, cin, h, w = x.shape
    k = kernel_size
    eff_k = dilation * (k - 1) + 1
    oh = (h + 2 * padding - eff_k) // stride + 1
    ow = (w + 2 * padding - eff_k) // stride + 1

    xp = jnp.pad(x, ((0, 0), (0, 0), (padding, padding), (padding, padding)))

    slabs = []
    for kh in range(k):
        for kw in range(k):
            hs = kh * dilation
            ws = kw * dilation
            slabs.append(
                xp[:, :, hs:hs + stride * oh:stride, ws:ws + stride * ow:stride]
            )  # (N, Cin, OH, OW)
    # column ordering cin*K*K + kh*K + kw, matching torch weight.reshape(Cout, -1)
    cols = jnp.stack(slabs, axis=2)                  # (N, Cin, K*K, OH, OW)
    cols = cols.reshape(n, cin * k * k, oh * ow)     # (N, Cin*K*K, OH*OW)
    cols = jnp.transpose(cols, (0, 2, 1))            # (N, OH*OW, Cin*K*K)
    return cols, oh, ow


@functools.partial(
    jax.jit,
    static_argnames=("kernel_size", "stride", "padding", "dilation", "use_relu",
                     "block_m", "block_k", "compute_dtype"),
)
def conv2d_bn_relu(x, weight, gamma, beta, *, kernel_size, stride=1, padding=0,
                   dilation=1, use_relu=True, block_m=1024, block_k=512,
                   compute_dtype=jnp.bfloat16):
    """Forward of Conv2dBn (conv no-bias + BatchNorm2d training-mode [+ ReLU]).

    x: (N, Cin, H, W), weight: (Cout, Cin, K, K). Returns (N, Cout, OH, OW) f32.
    """
    n_batch = x.shape[0]
    cout = weight.shape[0]

    patches, oh, ow = _im2col(x, kernel_size, stride, padding, dilation)  # (N, SP, Kd)
    sp = oh * ow
    kd = patches.shape[-1]
    m_total = n_batch * sp

    itemsize = jnp.dtype(compute_dtype).itemsize

    # ---- hardware-friendly padding / tiling -------------------------------
    cout_p = _mxu_align(cout)
    kd_p = _mxu_align(kd)
    if kd_p <= block_k:
        tk = kd_p                          # single contraction block
    else:
        tk = _round_up(block_k, _LANE)
        kd_p = _round_up(kd_p, tk)

    # 128-row alignment keeps the transposed pass-2 output lane-dense and
    # automatically satisfies the bf16/int8 sublane-packing requirement.
    t_sp_align = max(_LANE, _sublane_multiple(compute_dtype))
    t_sp = _round_up(min(block_m, sp), t_sp_align)
    sp_p = _round_up(sp, t_sp)

    grid_sp = sp_p // t_sp
    grid_k = kd_p // tk

    y_dtype = jnp.float32 if jnp.dtype(compute_dtype) == jnp.float32 else jnp.bfloat16

    patches_p = jnp.pad(
        patches, ((0, 0), (0, sp_p - sp), (0, kd_p - kd))).astype(compute_dtype)
    w_mat = weight.reshape(cout, kd).T                               # (Kd, Cout)
    w_p = jnp.pad(w_mat, ((0, kd_p - kd), (0, cout_p - cout))).astype(compute_dtype)
    gamma_p = jnp.pad(gamma.astype(jnp.float32).reshape(1, cout),
                      ((0, 0), (0, cout_p - cout)))                  # zero-padded!
    beta_p = jnp.pad(beta.astype(jnp.float32).reshape(1, cout),
                     ((0, 0), (0, cout_p - cout)))

    # Per-step VMEM estimate (double-buffered in/out tiles + f32 accumulator);
    # only raise the scoped-VMEM limit when the ~32 MiB default would be tight
    # (never above 60 MiB so we stay inside v7x's 64 MiB physical VMEM).
    vmem_est = (2 * t_sp * tk * itemsize + 2 * tk * cout_p * itemsize
                + 2 * t_sp * cout_p * jnp.dtype(y_dtype).itemsize
                + t_sp * cout_p * 4 + 8 * cout_p * 4)
    vmem_limit = (min(2 * vmem_est + (8 << 20), 60 << 20)
                  if vmem_est > (24 << 20) else None)

    # ---- pass 1: tiled GEMM + per-image channel statistics ----------------
    y_flat, part_sum, part_sq = pl.pallas_call(
        _matmul_stats_kernel,
        grid=(n_batch, grid_sp, grid_k),
        in_specs=[
            pl.BlockSpec((1, t_sp, tk), lambda n, j, k: (n, j, k)),
            pl.BlockSpec((tk, cout_p), lambda n, j, k: (k, 0)),
        ],
        out_specs=[
            pl.BlockSpec((1, t_sp, cout_p), lambda n, j, k: (n, j, 0)),
            pl.BlockSpec((1, 1, cout_p), lambda n, j, k: (n, 0, 0)),
            pl.BlockSpec((1, 1, cout_p), lambda n, j, k: (n, 0, 0)),
        ],
        out_shape=[
            jax.ShapeDtypeStruct((n_batch, sp_p, cout_p), y_dtype),
            jax.ShapeDtypeStruct((n_batch, 1, cout_p), jnp.float32),
            jax.ShapeDtypeStruct((n_batch, 1, cout_p), jnp.float32),
        ],
        scratch_shapes=[pltpu.VMEM((t_sp, cout_p), jnp.float32)],
        compiler_params=pltpu.CompilerParams(
            dimension_semantics=("parallel", "arbitrary", "arbitrary"),
            vmem_limit_bytes=vmem_limit),
    )(patches_p, w_p)

    # ---- hoisted BN coefficients (tiny (1, Cout_p) vectors) ----------------
    ch_sum = jnp.sum(part_sum, axis=0)                       # (1, cout_p)
    ch_sq = jnp.sum(part_sq, axis=0)
    inv_m = 1.0 / float(m_total)
    mean = ch_sum * inv_m
    # one-pass variance can go slightly negative from cancellation -> clamp
    var = jnp.maximum(ch_sq * inv_m - mean * mean, 0.0)
    inv_std = jax.lax.rsqrt(var + BN_EPS)
    scale = inv_std * gamma_p                                # padded lanes: gamma=0
    shift = beta_p - mean * scale

    # ---- pass 2: BN (+ReLU) + in-kernel transpose to channel-major ---------
    o_cmaj = pl.pallas_call(
        functools.partial(_bn_relu_t_kernel, use_relu=use_relu),
        grid=(n_batch, grid_sp),
        in_specs=[
            pl.BlockSpec((1, t_sp, cout_p), lambda n, j: (n, j, 0)),
            pl.BlockSpec((1, cout_p), lambda n, j: (0, 0)),
            pl.BlockSpec((1, cout_p), lambda n, j: (0, 0)),
        ],
        out_specs=pl.BlockSpec((1, cout_p, t_sp), lambda n, j: (n, 0, j)),
        out_shape=jax.ShapeDtypeStruct((n_batch, cout_p, sp_p), jnp.float32),
        compiler_params=pltpu.CompilerParams(
            dimension_semantics=("parallel", "parallel"),
            vmem_limit_bytes=vmem_limit),
    )(y_flat, scale, shift)

    # Already channel-major: just strip padding and fold SP back into (OH, OW).
    out = o_cmaj[:, :cout, :sp].reshape(n_batch, cout, oh, ow)
    return out


def _reference(x, weight, gamma, beta, *, stride, padding, dilation, use_relu=True):
    """Pure-JAX reference: lax.conv + training-mode BN (+ ReLU), all float32."""
    y = jax.lax.conv_general_dilated(
        x, weight,
        window_strides=(stride, stride),
        padding=[(padding, padding), (padding, padding)],
        rhs_dilation=(dilation, dilation),
        dimension_numbers=("NCHW", "OIHW", "NCHW"),
    )
    mean = jnp.mean(y, axis=(0, 2, 3), keepdims=True)
    var = jnp.mean((y - mean) ** 2, axis=(0, 2, 3), keepdims=True)
    y_hat = (y - mean) * jax.lax.rsqrt(var + BN_EPS)
    y_hat = y_hat * gamma.reshape(1, -1, 1, 1) + beta.reshape(1, -1, 1, 1)
    return jnp.maximum(y_hat, 0.0) if use_relu else y_hat


if __name__ == "__main__":
    def run_case(name, n, cin, h, w, cout, k, stride, pad, dil, *, block_m, block_k,
                 compute_dtype, atol, rtol, key):
        kx, kw_ = jax.random.split(key)
        x = jax.random.normal(kx, (n, cin, h, w), dtype=jnp.float32)
        weight = jax.random.normal(kw_, (cout, cin, k, k), dtype=jnp.float32) * 0.1
        gamma = jnp.ones((cout,), dtype=jnp.float32)   # BatchNorm2d weight init
        beta = jnp.zeros((cout,), dtype=jnp.float32)   # BatchNorm2d bias init
        ref = _reference(x, weight, gamma, beta, stride=stride, padding=pad, dilation=dil)
        out = conv2d_bn_relu(x, weight, gamma, beta, kernel_size=k, stride=stride,
                             padding=pad, dilation=dil, block_m=block_m,
                             block_k=block_k, compute_dtype=compute_dtype)
        out = jax.block_until_ready(out)
        assert out.shape == ref.shape, (name, out.shape, ref.shape)
        max_err = float(jnp.max(jnp.abs(out - ref)))
        assert jnp.allclose(out, ref, atol=atol, rtol=rtol), (name, max_err)

    key = jax.random.PRNGKey(0)
    k0, k1 = jax.random.split(key)

    # Conv2dBn(4, 8, 3, stride=1, padding=1) — the module's small config.
    # f32 path: tight check; block_m=128 deliberately small here to exercise the
    # multi-spatial-tile path at this tiny shape (default stays 1024).
    run_case("c1_f32", 2, 4, 16, 16, 8, 3, 1, 1, 1,
             block_m=128, block_k=512, compute_dtype=jnp.float32,
             atol=1e-4, rtol=1e-4, key=k0)
    # Default bf16 MXU path with bf16 Y intermediate (f32 accumulation / BN).
    run_case("c1_bf16", 2, 4, 16, 16, 8, 3, 1, 1, 1,
             block_m=1024, block_k=512, compute_dtype=jnp.bfloat16,
             atol=6e-2, rtol=6e-2, key=k0)
    # Larger-channel case: Kd=144 -> kd_p=256 with block_k=128 exercises the
    # innermost kd reduction axis (two contraction blocks per tile).
    run_case("c2_f32", 2, 16, 8, 8, 32, 3, 1, 1, 1,
             block_m=1024, block_k=128, compute_dtype=jnp.float32,
             atol=1e-4, rtol=1e-4, key=k1)
    run_case("c2_bf16", 2, 16, 8, 8, 32, 3, 1, 1, 1,
             block_m=1024, block_k=128, compute_dtype=jnp.bfloat16,
             atol=6e-2, rtol=6e-2, key=k1)

    print("KERNEL_OK")
</pallas_src>

<mosaic_0001>
module attributes {stable_mosaic.version = 11 : i64} {
  func.func @_matmul_stats_kernel(%arg0: i32, %arg1: i32, %arg2: i32, %arg3: memref<1x128x128xf32, #tpu.memory_space<vmem>>, %arg4: memref<128x128xf32, #tpu.memory_space<vmem>>, %arg5: memref<1x128x128xf32, #tpu.memory_space<vmem>>, %arg6: memref<1x1x128xf32, #tpu.memory_space<vmem>>, %arg7: memref<1x1x128xf32, #tpu.memory_space<vmem>>, %arg8: memref<128x128xf32, #tpu.memory_space<vmem>>) attributes {dimension_semantics = [#tpu.dimension_semantics<parallel>, #tpu.dimension_semantics<arbitrary>, #tpu.dimension_semantics<arbitrary>], iteration_bounds = array<i64: 2, 2, 1>, scalar_prefetch = 0 : i64, scratch_operands = 1 : i64, tpu.core_type = #tpu.core_type<tc>, window_params = [{transform_indices = @transform_0, window_bounds = array<i64: 1, 128, 128>}, {transform_indices = @transform_1, window_bounds = array<i64: 128, 128>}, {transform_indices = @transform_2, window_bounds = array<i64: 1, 128, 128>}, {transform_indices = @transform_3, window_bounds = array<i64: 1, 1, 128>}, {transform_indices = @transform_4, window_bounds = array<i64: 1, 1, 128>}]} {
    %c0_i32 = arith.constant 0 : i32
    %0 = arith.cmpi eq, %arg2, %c0_i32 : i32
    %1 = arith.extui %0 : i1 to i32
    %c0_i32_0 = arith.constant 0 : i32
    %2 = arith.cmpi ne, %1, %c0_i32_0 : i32
    scf.if %2 {
      %cst_14 = arith.constant 0.000000e+00 : f32
      %18 = vector.broadcast %cst_14 : f32 to vector<128x128xf32>
      %c0_15 = arith.constant 0 : index
      %c0_16 = arith.constant 0 : index
      %19 = vector.load %arg8[%c0_15, %c0_16] : memref<128x128xf32, #tpu.memory_space<vmem>>, vector<128x128xf32>
      tpu.vector_store %arg8[%c0_15, %c0_16], %18 {strides = array<i32>} : memref<128x128xf32, #tpu.memory_space<vmem>>, vector<128x128xf32>,
    } else {
    }
    %c0_i32_1 = arith.constant 0 : i32
    %3 = arith.cmpi eq, %arg1, %c0_i32_1 : i32
    %c0_i32_2 = arith.constant 0 : i32
    %4 = arith.cmpi eq, %arg2, %c0_i32_2 : i32
    %5 = arith.andi %3, %4 : i1
    %6 = arith.extui %5 : i1 to i32
    %c0_i32_3 = arith.constant 0 : i32
    %7 = arith.cmpi ne, %6, %c0_i32_3 : i32
    scf.if %7 {
      %cst_14 = arith.constant 0.000000e+00 : f32
      %18 = vector.broadcast %cst_14 : f32 to vector<1x1x128xf32>
      %c0_15 = arith.constant 0 : index
      %c0_16 = arith.constant 0 : index
      %c0_17 = arith.constant 0 : index
      %19 = vector.load %arg6[%c0_15, %c0_16, %c0_17] : memref<1x1x128xf32, #tpu.memory_space<vmem>>, vector<1x1x128xf32>
      tpu.vector_store %arg6[%c0_15, %c0_16, %c0_17], %18 {strides = array<i32>} : memref<1x1x128xf32, #tpu.memory_space<vmem>>, vector<1x1x128xf32>,
      %cst_18 = arith.constant 0.000000e+00 : f32
      %20 = vector.broadcast %cst_18 : f32 to vector<1x1x128xf32>
      %c0_19 = arith.constant 0 : index
      %c0_20 = arith.constant 0 : index
      %c0_21 = arith.constant 0 : index
      %21 = vector.load %arg7[%c0_19, %c0_20, %c0_21] : memref<1x1x128xf32, #tpu.memory_space<vmem>>, vector<1x1x128xf32>
      tpu.vector_store %arg7[%c0_19, %c0_20, %c0_21], %20 {strides = array<i32>} : memref<1x1x128xf32, #tpu.memory_space<vmem>>, vector<1x1x128xf32>,
    } else {
    }
    %c0 = arith.constant 0 : index
    %c0_4 = arith.constant 0 : index
    %8 = vector.load %arg8[%c0, %c0_4] : memref<128x128xf32, #tpu.memory_space<vmem>>, vector<128x128xf32>
    %c0_5 = arith.constant 0 : index
    %c0_6 = arith.constant 0 : index
    %c0_7 = arith.constant 0 : index
    %9 = vector.load %arg3[%c0_5, %c0_6, %c0_7] : memref<1x128x128xf32, #tpu.memory_space<vmem>>, vector<1x128x128xf32>
    %10 = vector.shape_cast %9 : vector<1x128x128xf32> to vector<128x128xf32>
    %c0_8 = arith.constant 0 : index
    %c0_9 = arith.constant 0 : index
    %11 = vector.load %arg4[%c0_8, %c0_9] : memref<128x128xf32, #tpu.memory_space<vmem>>, vector<128x128xf32>
    %cst = arith.constant dense<0.000000e+00> : vector<128x128xf32>
    %12 = tpu.matmul %10, %11, %cst {dimension_numbers = #tpu.dot_dimension_numbers<[1], [0], [0], [1], [0, 0, 1, 1], [], []>} : vector<128x128xf32>, vector<128x128xf32>, vector<128x128xf32> -> vector<128x128xf32>
    %13 = arith.addf %8, %12 : vector<128x128xf32>
    %c0_10 = arith.constant 0 : index
    %c0_11 = arith.constant 0 : index
    %14 = vector.load %arg8[%c0_10, %c0_11] : memref<128x128xf32, #tpu.memory_space<vmem>>, vector<128x128xf32>
    tpu.vector_store %arg8[%c0_10, %c0_11], %13 {strides = array<i32>} : memref<128x128xf32, #tpu.memory_space<vmem>>, vector<128x128xf32>,
    %c0_i32_12 = arith.constant 0 : i32
    %15 = arith.cmpi eq, %arg2, %c0_i32_12 : i32
    %16 = arith.extui %15 : i1 to i32
    %c0_i32_13 = arith.constant 0 : i32
    %17 = arith.cmpi ne, %16, %c0_i32_13 : i32
    scf.if %17 {
      %c0_14 = arith.constant 0 : index
      %c0_15 = arith.constant 0 : index
      %18 = vector.load %arg8[%c0_14, %c0_15] : memref<128x128xf32, #tpu.memory_space<vmem>>, vector<128x128xf32>
      %c0_16 = arith.constant 0 : index
      %c0_17 = arith.constant 0 : index
      %c0_18 = arith.constant 0 : index
      %19 = vector.load %arg5[%c0_16, %c0_17, %c0_18] : memref<1x128x128xf32, #tpu.memory_space<vmem>>, vector<1x128x128xf32>
      %20 = vector.shape_cast %19 : vector<1x128x128xf32> to vector<128x128xf32>
      %21 = vector.shape_cast %18 : vector<128x128xf32> to vector<1x128x128xf32>
      tpu.vector_store %arg5[%c0_16, %c0_17, %c0_18], %21 {strides = array<i32>} : memref<1x128x128xf32, #tpu.memory_space<vmem>>, vector<1x128x128xf32>,
      %c0_19 = arith.constant 0 : index
      %c0_20 = arith.constant 0 : index
      %c0_21 = arith.constant 0 : index
      %22 = vector.load %arg6[%c0_19, %c0_20, %c0_21] : memref<1x1x128xf32, #tpu.memory_space<vmem>>, vector<1x1x128xf32>
      %cst_22 = arith.constant dense<0.000000e+00> : vector<128xf32>
      %23 = vector.multi_reduction <add>, %18, %cst_22 [0] : vector<128x128xf32> to vector<128xf32>
      %24 = vector.shape_cast %23 : vector<128xf32> to vector<1x128xf32>
      %25 = vector.shape_cast %24 : vector<1x128xf32> to vector<1x1x128xf32>
      %26 = arith.addf %22, %25 : vector<1x1x128xf32>
      %c0_23 = arith.constant 0 : index
      %c0_24 = arith.constant 0 : index
      %c0_25 = arith.constant 0 : index
      %27 = vector.load %arg6[%c0_23, %c0_24, %c0_25] : memref<1x1x128xf32, #tpu.memory_space<vmem>>, vector<1x1x128xf32>
      tpu.vector_store %arg6[%c0_23, %c0_24, %c0_25], %26 {strides = array<i32>} : memref<1x1x128xf32, #tpu.memory_space<vmem>>, vector<1x1x128xf32>,
      %c0_26 = arith.constant 0 : index
      %c0_27 = arith.constant 0 : index
      %c0_28 = arith.constant 0 : index
      %28 = vector.load %arg7[%c0_26, %c0_27, %c0_28] : memref<1x1x128xf32, #tpu.memory_space<vmem>>, vector<1x1x128xf32>
      %29 = arith.mulf %18, %18 : vector<128x128xf32>
      %cst_29 = arith.constant dense<0.000000e+00> : vector<128xf32>
      %30 = vector.multi_reduction <add>, %29, %cst_29 [0] : vector<128x128xf32> to vector<128xf32>
      %31 = vector.shape_cast %30 : vector<128xf32> to vector<1x128xf32>
      %32 = vector.shape_cast %31 : vector<1x128xf32> to vector<1x1x128xf32>
      %33 = arith.addf %28, %32 : vector<1x1x128xf32>
      %c0_30 = arith.constant 0 : index
      %c0_31 = arith.constant 0 : index
      %c0_32 = arith.constant 0 : index
      %34 = vector.load %arg7[%c0_30, %c0_31, %c0_32] : memref<1x1x128xf32, #tpu.memory_space<vmem>>, vector<1x1x128xf32>
      tpu.vector_store %arg7[%c0_30, %c0_31, %c0_32], %33 {strides = array<i32>} : memref<1x1x128xf32, #tpu.memory_space<vmem>>, vector<1x1x128xf32>,
    } else {
    }
    return
  }
  func.func @transform_0(%arg0: i32, %arg1: i32, %arg2: i32) -> (i32, i32, i32) {
    %c0_i32 = arith.constant 0 : i32
    return %arg0, %arg1, %arg2 : i32, i32, i32
  }
  func.func @transform_1(%arg0: i32, %arg1: i32, %arg2: i32) -> (i32, i32) {
    %c0_i32 = arith.constant 0 : i32
    %c0_i32_0 = arith.constant 0 : i32
    return %arg2, %c0_i32 : i32, i32
  }
  func.func @transform_2(%arg0: i32, %arg1: i32, %arg2: i32) -> (i32, i32, i32) {
    %c0_i32 = arith.constant 0 : i32
    %c0_i32_0 = arith.constant 0 : i32
    return %arg0, %arg1, %c0_i32 : i32, i32, i32
  }
  func.func @transform_3(%arg0: i32, %arg1: i32, %arg2: i32) -> (i32, i32, i32) {
    %c0_i32 = arith.constant 0 : i32
    %c0_i32_0 = arith.constant 0 : i32
    %c0_i32_1 = arith.constant 0 : i32
    return %arg0, %c0_i32, %c0_i32_0 : i32, i32, i32
  }
  func.func @transform_4(%arg0: i32, %arg1: i32, %arg2: i32) -> (i32, i32, i32) {
    %c0_i32 = arith.constant 0 : i32
    %c0_i32_0 = arith.constant 0 : i32
    %c0_i32_1 = arith.constant 0 : i32
    return %arg0, %c0_i32, %c0_i32_0 : i32, i32, i32
  }
}

module attributes {stable_mosaic.version = 11 : i64} {
  func.func @_bn_relu_t_kernel(%arg0: i32, %arg1: i32, %arg2: memref<1x128x128xf32, #tpu.memory_space<vmem>>, %arg3: memref<1x128xf32, #tpu.memory_space<vmem>>, %arg4: memref<1x128xf32, #tpu.memory_space<vmem>>, %arg5: memref<1x128x128xf32, #tpu.memory_space<vmem>>) attributes {dimension_semantics = [#tpu.dimension_semantics<parallel>, #tpu.dimension_semantics<parallel>], iteration_bounds = array<i64: 2, 2>, scalar_prefetch = 0 : i64, scratch_operands = 0 : i64, tpu.core_type = #tpu.core_type<tc>, window_params = [{transform_indices = @transform_0, window_bounds = array<i64: 1, 128, 128>}, {pipeline_mode = #tpu.pipeline_mode<synchronous>, transform_indices = @transform_1, window_bounds = array<i64: 1, 128>}, {pipeline_mode = #tpu.pipeline_mode<synchronous>, transform_indices = @transform_2, window_bounds = array<i64: 1, 128>}, {transform_indices = @transform_3, window_bounds = array<i64: 1, 128, 128>}]} {
    %c0 = arith.constant 0 : index
    %c0_0 = arith.constant 0 : index
    %c0_1 = arith.constant 0 : index
    %0 = vector.load %arg2[%c0, %c0_0, %c0_1] : memref<1x128x128xf32, #tpu.memory_space<vmem>>, vector<1x128x128xf32>
    %1 = vector.shape_cast %0 : vector<1x128x128xf32> to vector<128x128xf32>
    %c0_2 = arith.constant 0 : index
    %c0_3 = arith.constant 0 : index
    %2 = vector.load %arg3[%c0_2, %c0_3] : memref<1x128xf32, #tpu.memory_space<vmem>>, vector<1x128xf32>
    %3 = vector.broadcast %2 : vector<1x128xf32> to vector<128x128xf32>
    %4 = arith.mulf %1, %3 : vector<128x128xf32>
    %c0_4 = arith.constant 0 : index
    %c0_5 = arith.constant 0 : index
    %5 = vector.load %arg4[%c0_4, %c0_5] : memref<1x128xf32, #tpu.memory_space<vmem>>, vector<1x128xf32>
    %6 = vector.broadcast %5 : vector<1x128xf32> to vector<128x128xf32>
    %7 = arith.addf %4, %6 : vector<128x128xf32>
    %cst = arith.constant 0.000000e+00 : f32
    %8 = vector.broadcast %cst : f32 to vector<128x128xf32>
    %9 = arith.maximumf %7, %8 : vector<128x128xf32>
    %10 = tpu.transpose %9, [1, 0] : vector<128x128xf32> -> vector<128x128xf32>
    %c0_6 = arith.constant 0 : index
    %c0_7 = arith.constant 0 : index
    %c0_8 = arith.constant 0 : index
    %11 = vector.load %arg5[%c0_6, %c0_7, %c0_8] : memref<1x128x128xf32, #tpu.memory_space<vmem>>, vector<1x128x128xf32>
    %12 = vector.shape_cast %11 : vector<1x128x128xf32> to vector<128x128xf32>
    %13 = vector.shape_cast %10 : vector<128x128xf32> to vector<1x128x128xf32>
    tpu.vector_store %arg5[%c0_6, %c0_7, %c0_8], %13 {strides = array<i32>} : memref<1x128x128xf32, #tpu.memory_space<vmem>>, vector<1x128x128xf32>,
    return
  }
  func.func @transform_0(%arg0: i32, %arg1: i32) -> (i32, i32, i32) {
    %c0_i32 = arith.constant 0 : i32
    %c0_i32_0 = arith.constant 0 : i32
    return %arg0, %arg1, %c0_i32 : i32, i32, i32
  }
  func.func @transform_1(%arg0: i32, %arg1: i32) -> (i32, i32) {
    %c0_i32 = arith.constant 0 : i32
    %c0_i32_0 = arith.constant 0 : i32
    %c0_i32_1 = arith.constant 0 : i32
    return %c0_i32, %c0_i32_0 : i32, i32
  }
  func.func @transform_2(%arg0: i32, %arg1: i32) -> (i32, i32) {
    %c0_i32 = arith.constant 0 : i32
    %c0_i32_0 = arith.constant 0 : i32
    %c0_i32_1 = arith.constant 0 : i32
    return %c0_i32, %c0_i32_0 : i32, i32
  }
  func.func @transform_3(%arg0: i32, %arg1: i32) -> (i32, i32, i32) {
    %c0_i32 = arith.constant 0 : i32
    %c0_i32_0 = arith.constant 0 : i32
    return %arg0, %c0_i32, %arg1 : i32, i32, i32
  }
}

</mosaic_0001>

<bundles_post_ra>
// kernel: conv2d_bn_relu.3
= control target key start
LH: loop header
LB: loop body
LE: loop exit
PB: predicated region body
PF: predicated region fallthrough
CT: control target
= control target key end

     0   :  { %s637_s12 = smov 0   ;;  %s639_s13 = smov 0   ;;  %s825_s0 = inlined_call_operand.vmem [shape: f32[2,256,128], index: 0, kind: input, shape index: {}]   ;;  %s826_s1 = inlined_call_operand.vmem [shape: f32[1,128], index: 1, kind: input, shape index: {}]   ;;  %s827_s2 = inlined_call_operand.vmem [shape: f32[1,128], index: 2, kind: input, shape index: {}]   ;;  %s828_s3 = inlined_call_operand.vmem [shape: f32[2,128,256], index: 3, kind: output, shape index: {}]  }
   0x1   :  { %s641_s14 = smov 0   ;;  %s643_s15 = smov 0  }
   0x2   :  { %s645_s16 = smov 0   ;;  %s647_s17 = smov 0  }
   0x3   :  { %s649_s18 = smov 0  }
   0x4 LB: > { %s22_s19 = sadd.s32 1, %s607_s16  ;;  %s25_s20 = sadd.s32 1, %s611_s17  ;;  %s615_s18 = sphi %s649_s18, %s13_s18   ;;  %s611_s17 = sphi %s647_s17, %s835_s17   ;;  %s607_s16 = sphi %s645_s16, %s834_s16   ;;  %s603_s15 = sphi %s643_s15, %s833_s15   ;;  %s599_s14 = sphi %s641_s14, %s832_s14   ;;  %s595_s13 = sphi %s639_s13, %s831_s13   ;;  %s591_s12 = sphi %s637_s12, %s830_s12  }
   0x5   : > { %p23_p0 = scmp.ge.s32.totalorder %s22_s19, 2  ;;  %s489_s21 = sadd.s32 4294967295, %s615_s18  }
   0x6   : > { %p114_p1 = scmp.ne.s32.totalorder %s595_s13, %s591_s12  ;;  %p115_p2 = scmp.eq.s32.totalorder %s489_s21, 3 }
   0x7   : > { %s837_s19 = smov (%p23_p0, %s22_s19), 0  ;;  %s839_s20 = smov (!%p23_p0, %s25_s20), %s611_s17 }
   0x8   : > { %s100_s22 = ssub.s32 %s607_s16, %s837_s19  ;;  %p27_p3 = scmp.ge.s32.totalorder %s839_s20, 2 }
   0x9   : > { %p493_p4 = scmp.ge.s32.totalorder %s615_s18, 1  ;;  %p683_p5 = por %p115_p2, %p114_p1 }
   0xa   : > { %p158_p6 = scmp.lt.s32.totalorder %s615_s18, 5  ;;  %s841_s20 = smov (%p27_p3, %s839_s20), 0 }
   0xb   : > { %s99_s24 = ssub.s32 %s611_s17, %s841_s20  ;;  %s104_s26 = sadd.s32 1, %s595_s13 }
   0xc   : > { %p159_p7 = pnand %p493_p4, %p158_p6  ;;  %s101_s25 = sor.u32 %s100_s22, %s99_s24 }
   0xd   : > { %p102_p8 = scmp.eq.s32.totalorder %s101_s25, 0  ;;  %s495_s28 = sshll.u32 (!%p159_p7), %s599_s14, 4 }
   0xe   : > { %162 = sbr.rel (%p159_p7) target bundleno = 326 (0x146), region = 32  ;;  %p186_p9 = scmp.lt.s32.totalorder (!%p159_p7), %s603_s15, 1 }
   0xf   : > { %s694_s27 = scalar_select %p102_p8, %s595_s13, %s104_s26  }
  0x10   : > { %p188_p10 = scmp.lt.s32.totalorder (!%p159_p7), %s495_s28, 31  ;;  %s182_s22 = sand.u32 (!%p159_p7), 1, %s591_s12  }
  0x11   : > { %s494_s24 = sshll.u32 (!%p159_p7), %s182_s22, 7 }
  0x12   : > { %s763_s25 = scalar_lea.vmem (!%p159_p7), [#allocation2], %s494_s24 }
  0x13   : > { %s187_s29 = scalar_select %p186_p9, %s603_s15, 1  ;;  %v702_v0 = vld [vmem:[%s826_s1] ss:$0 sm:$0xff] }
  0x14   : > { %s843_s28 = smov (!%p188_p10, %s495_s28), 31  ;;  %v712_v1 = vld [vmem:[%s827_s2] ss:$0 sm:$0xff]  ;;  %s499_s12 = sshll.u32 (%p683_p5), %s603_s15, 5 }
  0x15   : > { %s496_s30 = sshll.u32 %s187_s29, 5  ;;  %s323_s26 = sadd.s32 (%p683_p5), %s599_s14, %s499_s12 }
  0x16   : > { %s191_s4 = sadd.s32 %s496_s30, %s843_s28  ;;  %s500_s28 = sshll.u32 (%p683_p5), %s323_s26, 3 }
  0x17   : > { %s497_s7 = sshll.u32 %s191_s4, 3  ;;  %s325_s23 = scalar_lea.vmem (%p683_p5), %s828_s3, %s500_s28 }
  0x18   : > { %s707_s10 = scalar_lea.vmem %s825_s0, %s497_s7 }
  0x19   : > { %v195_v2 = vld [vmem:[%s707_s10] sm:$0xff]  ;;  %v196_v3 = vld [vmem:[%s707_s10 + $0x8] sm:$0xff]  ;;  %v197_v9 = vld [vmem:[%s707_s10 + $0x10] sm:$0xff] }
  0x1a   : > { %v215_v4 = vmul.f32 %v702_v0, %v195_v2  ;;  %v216_v6 = vmul.f32 %v702_v0, %v196_v3  ;;  %v217_v11 = vmul.f32 %v702_v0, %v197_v9  ;;  %v198_v13 = vld [vmem:[%s707_s10 + $0x18] sm:$0xff]  ;;  %v199_v17 = vld [vmem:[%s707_s10 + $0x20] sm:$0xff]  ;;  %v200_v21 = vld [vmem:[%s707_s10 + $0x28] sm:$0xff] }
  0x1b   : > { %v218_v15 = vmul.f32 %v702_v0, %v198_v13  ;;  %v219_v19 = vmul.f32 %v702_v0, %v199_v17  ;;  %v220_v23 = vmul.f32 %v702_v0, %v200_v21  ;;  %v201_v25 = vld [vmem:[%s707_s10 + $0x30] sm:$0xff]  ;;  %v202_v29 = vld [vmem:[%s707_s10 + $0x38] sm:$0xff]  ;;  %v203_v33 = vld [vmem:[%s707_s10 + $0x40] sm:$0xff] }
  0x1c   : > { %v235_v5 = vadd.f32 %v712_v1, %v215_v4  ;;  %v236_v8 = vadd.f32 %v712_v1, %v216_v6  ;;  %v237_v12 = vadd.f32 %v712_v1, %v217_v11  ;;  %v221_v27 = vmul.f32 %v702_v0, %v201_v25  ;;  %v204_v37 = vld [vmem:[%s707_s10 + $0x48] sm:$0xff]  ;;  %v205_v41 = vld [vmem:[%s707_s10 + $0x50] sm:$0xff]  ;;  %v206_v45 = vld [vmem:[%s707_s10 + $0x58] sm:$0xff] }
  0x1d   : > { %v238_v16 = vadd.f32 %v712_v1, %v218_v15  ;;  %v239_v20 = vadd.f32 %v712_v1, %v219_v19  ;;  %v240_v24 = vadd.f32 %v712_v1, %v220_v23  ;;  %v222_v31 = vmul.f32 %v702_v0, %v202_v29  ;;  %v207_v49 = vld [vmem:[%s707_s10 + $0x60] sm:$0xff]  ;;  %v208_v53 = vld [vmem:[%s707_s10 + $0x68] sm:$0xff]  ;;  %v209_v57 = vld [vmem:[%s707_s10 + $0x70] sm:$0xff] }
  0x1e   : > { %v251_v7 = vmax.f32 %v235_v5, 0.0  ;;  %v252_v10 = vmax.f32 %v236_v8, 0.0  ;;  %v253_v14 = vmax.f32 %v237_v12, 0.0  ;;  %v241_v28 = vadd.f32 %v712_v1, %v221_v27  ;;  %v210_v61 = vld [vmem:[%s707_s10 + $0x78] sm:$0xff] }
  0x1f   : > { %v254_v18 = vmax.f32 %v238_v16, 0.0  ;;  %v255_v22 = vmax.f32 %v239_v20, 0.0  ;;  %v256_v26 = vmax.f32 %v240_v24, 0.0  ;;  %v242_v32 = vadd.f32 %v712_v1, %v222_v31 }
  0x20   : > { %267 = vxpose.xlu0.b32.start [1/16] %v251_v7, 128  ;;  %v257_v30 = vmax.f32 %v241_v28, 0.0  ;;  %v223_v35 = vmul.f32 %v702_v0, %v203_v33  ;;  %v224_v39 = vmul.f32 %v702_v0, %v204_v37  ;;  %v225_v43 = vmul.f32 %v702_v0, %v205_v41 }
  0x21   : > { %v258_v34 = vmax.f32 %v242_v32, 0.0  ;;  %v226_v47 = vmul.f32 %v702_v0, %v206_v45  ;;  %v227_v51 = vmul.f32 %v702_v0, %v207_v49  ;;  %v228_v55 = vmul.f32 %v702_v0, %v208_v53 }
  0x22   : > { %v243_v36 = vadd.f32 %v712_v1, %v223_v35  ;;  %v244_v40 = vadd.f32 %v712_v1, %v224_v39  ;;  %v245_v44 = vadd.f32 %v712_v1, %v225_v43  ;;  %v229_v59 = vmul.f32 %v702_v0, %v209_v57 }
  0x23   : > { %v246_v48 = vadd.f32 %v712_v1, %v226_v47  ;;  %v247_v52 = vadd.f32 %v712_v1, %v227_v51  ;;  %v248_v56 = vadd.f32 %v712_v1, %v228_v55  ;;  %v230_v63 = vmul.f32 %v702_v0, %v210_v61 }
  0x24   : > { %v259_v38 = vmax.f32 %v243_v36, 0.0  ;;  %v260_v42 = vmax.f32 %v244_v40, 0.0  ;;  %v261_v46 = vmax.f32 %v245_v44, 0.0  ;;  %v249_v60 = vadd.f32 %v712_v1, %v229_v59 }
  0x25   : > { %v262_v50 = vmax.f32 %v246_v48, 0.0  ;;  %v263_v54 = vmax.f32 %v247_v52, 0.0  ;;  %v264_v58 = vmax.f32 %v248_v56, 0.0  ;;  %v250_v2 = vadd.f32 %v712_v1, %v230_v63 }
  0x26   : > { %v265_v62 = vmax.f32 %v249_v60, 0.0 }
  0x27   : > { %v266_v3 = vmax.f32 %v250_v2, 0.0 }
  0x28   : > { %268 = vxpose.xlu0.b32.cont [2/16] %v252_v10, 128 }
  0x30   : > { %269 = vxpose.xlu0.b32.cont [3/16] %v253_v14, 128 }
  0x38   : > { %270 = vxpose.xlu0.b32.cont [4/16] %v254_v18, 128 }
  0x40   : > { %271 = vxpose.xlu0.b32.cont [5/16] %v255_v22, 128 }
  0x48   : > { %272 = vxpose.xlu0.b32.cont [6/16] %v256_v26, 128 }
  0x50   : > { %273 = vxpose.xlu0.b32.cont [7/16] %v257_v30, 128 }
  0x58   : > { %274 = vxpose.xlu0.b32.cont [8/16] %v258_v34, 128 }
  0x60   : > { %275 = vxpose.xlu0.b32.cont [9/16] %v259_v38, 128 }
  0x68   : > { %276 = vxpose.xlu0.b32.cont [10/16] %v260_v42, 128 }
  0x70   : > { %277 = vxpose.xlu0.b32.cont [11/16] %v261_v46, 128 }
  0x78   : > { %278 = vxpose.xlu0.b32.cont [12/16] %v262_v50, 128 }
  0x80   : > { %279 = vxpose.xlu0.b32.cont [13/16] %v263_v54, 128 }
  0x88   : > { %280 = vxpose.xlu0.b32.cont [14/16] %v264_v58, 128 }
  0x90   : > { %281 = vxpose.xlu0.b32.cont [15/16] %v265_v62, 128 }
  0x98   : > { %282 = vxpose.xlu0.b32.end [16/16] %v266_v3, 128 }
  0xc4   : > { %v283_v4 = vpop.trf.xlu0 }
  0xc5   : > { %299 = vst [vmem:[%s763_s25] sm:$0xff] %v283_v4 }
  0xcc   : > { %v284_v0 = vpop.trf.xlu0  ;;  %v384_v18 = vld [vmem:[%s763_s25] sm:$0xff] (%p683_p5) }
  0xcd   : > { %300 = vst [vmem:[%s763_s25 + $0x8] sm:$0xff] %v284_v0 }
  0xce   : > { %385 = vst [vmem:[%s325_s23] sm:$0xff] (%p683_p5), %v384_v18 }
  0xd4   : > { %v285_v1 = vpop.trf.xlu0  ;;  %v386_v19 = vld [vmem:[%s763_s25 + $0x8] sm:$0xff] (%p683_p5) }
  0xd5   : > { %301 = vst [vmem:[%s763_s25 + $0x10] sm:$0xff] %v285_v1 }
  0xd6   : > { %387 = vst [vmem:[%s325_s23 + $0x10] sm:$0xff] (%p683_p5), %v386_v19 }
  0xdc   : > { %v286_v5 = vpop.trf.xlu0  ;;  %v388_v20 = vld [vmem:[%s763_s25 + $0x10] sm:$0xff] (%p683_p5) }
  0xdd   : > { %302 = vst [vmem:[%s763_s25 + $0x18] sm:$0xff] %v286_v5 }
  0xde   : > { %389 = vst [vmem:[%s325_s23 + $0x20] sm:$0xff] (%p683_p5), %v388_v20 }
  0xe4   : > { %v287_v6 = vpop.trf.xlu0  ;;  %v390_v21 = vld [vmem:[%s763_s25 + $0x18] sm:$0xff] (%p683_p5) }
  0xe5   : > { %303 = vst [vmem:[%s763_s25 + $0x20] sm:$0xff] %v287_v6 }
  0xe6   : > { %391 = vst [vmem:[%s325_s23 + $0x30] sm:$0xff] (%p683_p5), %v390_v21 }
  0xec   : > { %v288_v7 = vpop.trf.xlu0  ;;  %v392_v22 = vld [vmem:[%s763_s25 + $0x20] sm:$0xff] (%p683_p5) }
  0xed   : > { %304 = vst [vmem:[%s763_s25 + $0x28] sm:$0xff] %v288_v7 }
  0xee   : > { %393 = vst [vmem:[%s325_s23 + $0x40] sm:$0xff] (%p683_p5), %v392_v22 }
  0xf4   : > { %v289_v8 = vpop.trf.xlu0  ;;  %v394_v23 = vld [vmem:[%s763_s25 + $0x28] sm:$0xff] (%p683_p5) }
  0xf5   : > { %305 = vst [vmem:[%s763_s25 + $0x30] sm:$0xff] %v289_v8 }
  0xf6   : > { %395 = vst [vmem:[%s325_s23 + $0x50] sm:$0xff] (%p683_p5), %v394_v23 }
  0xfc   : > { %v290_v9 = vpop.trf.xlu0  ;;  %v396_v24 = vld [vmem:[%s763_s25 + $0x30] sm:$0xff] (%p683_p5) }
  0xfd   : > { %306 = vst [vmem:[%s763_s25 + $0x38] sm:$0xff] %v290_v9 }
  0xfe   : > { %397 = vst [vmem:[%s325_s23 + $0x60] sm:$0xff] (%p683_p5), %v396_v24 }
 0x104   : > { %v291_v10 = vpop.trf.xlu0  ;;  %v398_v25 = vld [vmem:[%s763_s25 + $0x38] sm:$0xff] (%p683_p5) }
 0x105   : > { %307 = vst [vmem:[%s763_s25 + $0x40] sm:$0xff] %v291_v10 }
 0x106   : > { %399 = vst [vmem:[%s325_s23 + $0x70] sm:$0xff] (%p683_p5), %v398_v25 }
 0x10c   : > { %v292_v11 = vpop.trf.xlu0  ;;  %v400_v26 = vld [vmem:[%s763_s25 + $0x40] sm:$0xff] (%p683_p5) }
 0x10d   : > { %308 = vst [vmem:[%s763_s25 + $0x48] sm:$0xff] %v292_v11 }
 0x10e   : > { %401 = vst [vmem:[%s325_s23 + $0x80] sm:$0xff] (%p683_p5), %v400_v26 }
 0x114   : > { %v293_v12 = vpop.trf.xlu0  ;;  %v402_v27 = vld [vmem:[%s763_s25 + $0x48] sm:$0xff] (%p683_p5) }
 0x115   : > { %309 = vst [vmem:[%s763_s25 + $0x50] sm:$0xff] %v293_v12 }
 0x116   : > { %403 = vst [vmem:[%s325_s23 + $0x90] sm:$0xff] (%p683_p5), %v402_v27 }
 0x11c   : > { %v294_v13 = vpop.trf.xlu0  ;;  %v404_v28 = vld [vmem:[%s763_s25 + $0x50] sm:$0xff] (%p683_p5) }
 0x11d   : > { %310 = vst [vmem:[%s763_s25 + $0x58] sm:$0xff] %v294_v13 }
 0x11e   : > { %405 = vst [vmem:[%s325_s23 + $0xa0] sm:$0xff] (%p683_p5), %v404_v28 }
 0x124   : > { %v295_v14 = vpop.trf.xlu0  ;;  %v406_v29 = vld [vmem:[%s763_s25 + $0x58] sm:$0xff] (%p683_p5) }
 0x125   : > { %311 = vst [vmem:[%s763_s25 + $0x60] sm:$0xff] %v295_v14 }
 0x126   : > { %407 = vst [vmem:[%s325_s23 + $0xb0] sm:$0xff] (%p683_p5), %v406_v29 }
 0x12c   : > { %v296_v15 = vpop.trf.xlu0  ;;  %v408_v30 = vld [vmem:[%s763_s25 + $0x60] sm:$0xff] (%p683_p5) }
 0x12d   : > { %312 = vst [vmem:[%s763_s25 + $0x68] sm:$0xff] %v296_v15 }
 0x12e   : > { %409 = vst [vmem:[%s325_s23 + $0xc0] sm:$0xff] (%p683_p5), %v408_v30 }
 0x134   : > { %v297_v16 = vpop.trf.xlu0  ;;  %v410_v31 = vld [vmem:[%s763_s25 + $0x68] sm:$0xff] (%p683_p5) }
 0x135   : > { %313 = vst [vmem:[%s763_s25 + $0x70] sm:$0xff] %v297_v16 }
 0x136   : > { %411 = vst [vmem:[%s325_s23 + $0xd0] sm:$0xff] (%p683_p5), %v410_v31 }
 0x139   : > { %321 = sbr.rel (!%p683_p5) target bundleno = 326 (0x146), region = 36 }
 0x13c   : > { %v298_v17 = vpop.trf.xlu0  ;;  %v412_v32 = vld [vmem:[%s763_s25 + $0x70] sm:$0xff] (%p683_p5) }
 0x13d   : > { %314 = vst [vmem:[%s763_s25 + $0x78] sm:$0xff] %v298_v17 }
 0x13e   : > { %413 = vst [vmem:[%s325_s23 + $0xe0] sm:$0xff] %v412_v32 }
 0x144   : > { %v414_v33 = vld [vmem:[%s763_s25 + $0x78] sm:$0xff] }
 0x145   : > { %415 = vst [vmem:[%s325_s23 + $0xf0] sm:$0xff] %v414_v33 }
 0x146 PF: > { %s13_s18 = sadd.s32 1, %s615_s18   ;;  %s830_s12 = smov %s595_s13 }
 0x147   : > { %p10_p11 = scmp.ge.s32.totalorder %s13_s18, 6   ;;  %s831_s13 = smov %s694_s27 }
 0x148   : > { %s832_s14 = smov %s607_s16  ;;  %s833_s15 = smov %s611_s17 }
 0x149   : > { %s834_s16 = smov %s837_s19  ;;  %s835_s17 = smov %s841_s20 }
 0x14a   :  { %12 = sbr.rel (!%p10_p11) target bundleno = 4 (0x4), region = 100 }

// kernel: conv2d_bn_relu.2
= control target key start
LH: loop header
LB: loop body
LE: loop exit
PB: predicated region body
PF: predicated region fallthrough
CT: control target
= control target key end

     0   :  { %s899_s15 = smov 0   ;;  %s901_s16 = smov 0   ;;  %s1098_s0 = inlined_call_operand.vmem [shape: f32[2,256,128], index: 0, kind: input, shape index: {}]   ;;  %s1099_s1 = inlined_call_operand.vmem [shape: f32[128,128], index: 1, kind: input, shape index: {}]   ;;  %s1100_s2 = inlined_call_operand.vmem [shape: f32[2,256,128], index: 2, kind: output, shape index: {0}]   ;;  %s1101_s3 = inlined_call_operand.vmem [shape: f32[2,1,128], index: 3, kind: output, shape index: {1}]   ;;  %s1102_s4 = inlined_call_operand.vmem [shape: f32[2,1,128], index: 4, kind: output, shape index: {2}]  }
   0x1   :  { %s903_s17 = smov 0   ;;  %s905_s18 = smov 0  }
   0x2   :  { %s907_s19 = smov 0  }
   0x3 LB: > { %s30_s20 = sadd.s32 1, %s862_s17  ;;  %s34_s21 = sadd.s32 1, %s866_s18  ;;  %s870_s19 = sphi %s907_s19, %s15_s19   ;;  %s866_s18 = sphi %s905_s18, %s1106_s18   ;;  %s862_s17 = sphi %s903_s17, %s1105_s17   ;;  %s858_s16 = sphi %s901_s16, %s1104_s16   ;;  %s854_s15 = sphi %s899_s15, %s1103_s15  }
   0x4   : > { %p32_p0 = scmp.ge.s32.totalorder %s30_s20, 2  ;;  %p731_p1 = scmp.ge.s32.totalorder %s870_s19, 1 }
   0x5   : > { %p211_p2 = scmp.lt.s32.totalorder %s870_s19, 5 }
   0x6   : > { %s1108_s20 = smov (%p32_p0, %s30_s20), 0  ;;  %s1110_s21 = smov (!%p32_p0, %s34_s21), %s866_s18 }
   0x7   : > { %p212_p3 = pnand %p731_p1, %p211_p2  ;;  %p36_p4 = scmp.ge.s32.totalorder %s1110_s21, 2 }
   0x8   : > { %s732_s22 = sshll.u32 (!%p212_p3), %s854_s15, 4  ;;  %p260_p5 = scmp.lt.s32.totalorder (!%p212_p3), %s858_s16, 1 }
   0x9   : > { %s1112_s21 = smov (%p36_p4, %s1110_s21), 0  ;;  %215 = sbr.rel (%p212_p3) target bundleno = 260 (0x104), region = 28 }
   0xa   : > { %p262_p6 = scmp.lt.s32.totalorder (!%p212_p3), %s732_s22, 31  ;;  %p314_p7 = scmp.eq.s32.totalorder (!%p212_p3), %s854_s15, 0 }
   0xe   : > { %v872_v0 = vmov 0.0   ;;  %s1114_s16 = smov (!%p260_p5, %s858_s16), 1  ;;  %s1116_s22 = smov (!%p262_p6, %s732_s22), 31  ;;  %v873_v1 = vmov (%p314_p7), 0.0  }
   0xf   : > { %298 = vst [vmem:[#allocation2 + $0x30] sm:$0xff] %v872_v0  ;;  %s733_s23 = sshll.u32 %s1114_s16, 5  ;;  %s936_s26 = scalar_lea.vmem %s1101_s3, %s1114_s16 }
  0x10   : > { %299 = vst [vmem:[#allocation2] sm:$0xff] %v872_v0  ;;  %s268_s27 = sadd.s32 %s733_s23, %s1116_s22  ;;  %s941_s30 = scalar_lea.vmem %s1102_s4, %s1114_s16 }
  0x11   : > { %300 = vst [vmem:[#allocation2 + $0x58] sm:$0xff] %v872_v0  ;;  %s734_s5 = sshll.u32 %s268_s27, 3 }
  0x12   : > { %301 = vst [vmem:[#allocation2 + $0x18] sm:$0xff] %v872_v0  ;;  %s946_s8 = scalar_lea.vmem %s1098_s0, %s734_s5  ;;  %s951_s11 = scalar_lea.vmem %s1100_s2, %s734_s5 }
  0x13   : > { %302 = vst [vmem:[#allocation2 + $0x50] sm:$0xff] %v872_v0 }
  0x14   : > { %303 = vst [vmem:[#allocation2 + $0x68] sm:$0xff] %v872_v0 }
  0x15   : > { %304 = vst [vmem:[#allocation2 + $0x8] sm:$0xff] %v872_v0 }
  0x16   : > { %305 = vst [vmem:[#allocation2 + $0x48] sm:$0xff] %v872_v0 }
  0x17   : > { %306 = vst [vmem:[#allocation2 + $0x40] sm:$0xff] %v872_v0 }
  0x18   : > { %307 = vst [vmem:[#allocation2 + $0x20] sm:$0xff] %v872_v0 }
  0x19   : > { %308 = vst [vmem:[#allocation2 + $0x10] sm:$0xff] %v872_v0 }
  0x1a   : > { %309 = vst [vmem:[#allocation2 + $0x38] sm:$0xff] %v872_v0  ;;  %318 = sbr.rel (!%p314_p7) target bundleno = 33 (0x21), region = 36 }
  0x1b   : > { %310 = vst [vmem:[#allocation2 + $0x60] sm:$0xff] %v872_v0 }
  0x1c   : > { %311 = vst [vmem:[#allocation2 + $0x70] sm:$0xff] %v872_v0 }
  0x1d   : > { %312 = vst [vmem:[#allocation2 + $0x78] sm:$0xff] %v872_v0 }
  0x1e   : > { %313 = vst [vmem:[#allocation2 + $0x28] sm:$0xff] %v872_v0 }
  0x1f   : > { %319 = vst [vmem:[%s936_s26] sm:$0x1] %v873_v1 }
  0x20   : > { %320 = vst [vmem:[%s941_s30] sm:$0x1] %v873_v1 }
  0x21 PF: > { %v368_v2 = vld [vmem:[%s1099_s1 + $0x78] sm:$0xff]  ;;  %v367_v3 = vld [vmem:[%s1099_s1 + $0x70] sm:$0xff]  ;;  %v366_v4 = vld [vmem:[%s1099_s1 + $0x68] sm:$0xff] }
  0x22   : > { %369 = vmatpush.msra.mxu0 %v368_v2  ;;  %742 = vmatpush.msra.mxu1 %v368_v2  ;;  %v365_v5 = vld [vmem:[%s1099_s1 + $0x60] sm:$0xff]  ;;  %v364_v6 = vld [vmem:[%s1099_s1 + $0x58] sm:$0xff]  ;;  %v363_v7 = vld [vmem:[%s1099_s1 + $0x50] sm:$0xff] }
  0x23   : > { %743 = vmatpush.msra.mxu2 %v368_v2  ;;  %744 = vmatpush.msra.mxu3 %v368_v2  ;;  %v362_v8 = vld [vmem:[%s1099_s1 + $0x48] sm:$0xff]  ;;  %v361_v9 = vld [vmem:[%s1099_s1 + $0x40] sm:$0xff]  ;;  %v360_v10 = vld [vmem:[%s1099_s1 + $0x38] sm:$0xff] }
  0x24   : > { %370 = vmatpush.msra.mxu0 %v367_v3  ;;  %745 = vmatpush.msra.mxu1 %v367_v3  ;;  %v359_v11 = vld [vmem:[%s1099_s1 + $0x30] sm:$0xff]  ;;  %v358_v12 = vld [vmem:[%s1099_s1 + $0x28] sm:$0xff]  ;;  %v357_v13 = vld [vmem:[%s1099_s1 + $0x20] sm:$0xff] }
  0x25   : > { %746 = vmatpush.msra.mxu2 %v367_v3  ;;  %747 = vmatpush.msra.mxu3 %v367_v3  ;;  %v356_v14 = vld [vmem:[%s1099_s1 + $0x18] sm:$0xff]  ;;  %v355_v15 = vld [vmem:[%s1099_s1 + $0x10] sm:$0xff]  ;;  %v354_v16 = vld [vmem:[%s1099_s1 + $0x8] sm:$0xff] }
  0x26   : > { %371 = vmatpush.msra.mxu0 %v366_v4  ;;  %748 = vmatpush.msra.mxu1 %v366_v4  ;;  %v353_v17 = vld [vmem:[%s1099_s1] sm:$0xff]  ;;  %v338_v22 = vld [vmem:[%s946_s8 + $0x8] sm:$0xff]  ;;  %v339_v26 = vld [vmem:[%s946_s8 + $0x10] sm:$0xff] }
  0x27   : > { %749 = vmatpush.msra.mxu2 %v366_v4  ;;  %750 = vmatpush.msra.mxu3 %v366_v4  ;;  %v337_v18 = vld [vmem:[%s946_s8] sm:$0xff]  ;;  %v342_v23 = vld [vmem:[%s946_s8 + $0x28] sm:$0xff]  ;;  %v343_v27 = vld [vmem:[%s946_s8 + $0x30] sm:$0xff] }
  0x28   : > { %372 = vmatpush.msra.mxu0 %v365_v5  ;;  %751 = vmatpush.msra.mxu1 %v365_v5  ;;  %v341_v19 = vld [vmem:[%s946_s8 + $0x20] sm:$0xff]  ;;  %v346_v24 = vld [vmem:[%s946_s8 + $0x48] sm:$0xff]  ;;  %v347_v28 = vld [vmem:[%s946_s8 + $0x50] sm:$0xff] }
  0x29   : > { %752 = vmatpush.msra.mxu2 %v365_v5  ;;  %753 = vmatpush.msra.mxu3 %v365_v5  ;;  %v345_v20 = vld [vmem:[%s946_s8 + $0x40] sm:$0xff]  ;;  %v350_v25 = vld [vmem:[%s946_s8 + $0x68] sm:$0xff]  ;;  %v351_v29 = vld [vmem:[%s946_s8 + $0x70] sm:$0xff] }
  0x2a   : > { %373 = vmatpush.msra.mxu0 %v364_v6  ;;  %754 = vmatpush.msra.mxu1 %v364_v6  ;;  %v349_v21 = vld [vmem:[%s946_s8 + $0x60] sm:$0xff]  ;;  %v340_v30 = vld [vmem:[%s946_s8 + $0x18] sm:$0xff]  ;;  %v321_v34 = vld [vmem:[#allocation2 + $0x30] sm:$0xff] }
  0x2b   : > { %755 = vmatpush.msra.mxu2 %v364_v6  ;;  %756 = vmatpush.msra.mxu3 %v364_v6  ;;  %v344_v31 = vld [vmem:[%s946_s8 + $0x38] sm:$0xff]  ;;  %v325_v35 = vld [vmem:[#allocation2 + $0x50] sm:$0xff]  ;;  %v322_v40 = vld [vmem:[#allocation2] sm:$0xff] }
  0x2c   : > { %374 = vmatpush.msra.mxu0 %v363_v7  ;;  %757 = vmatpush.msra.mxu1 %v363_v7  ;;  %v348_v32 = vld [vmem:[%s946_s8 + $0x58] sm:$0xff]  ;;  %v326_v41 = vld [vmem:[#allocation2 + $0x68] sm:$0xff]  ;;  %v329_v44 = vld [vmem:[#allocation2 + $0x40] sm:$0xff] }
  0x2d   : > { %758 = vmatpush.msra.mxu2 %v363_v7  ;;  %759 = vmatpush.msra.mxu3 %v363_v7  ;;  %v352_v33 = vld [vmem:[%s946_s8 + $0x78] sm:$0xff]  ;;  %v333_v49 = vld [vmem:[#allocation2 + $0x60] sm:$0xff]  ;;  %v327_v53 = vld [vmem:[#allocation2 + $0x8] sm:$0xff] }
  0x2e   : > { %375 = vmatpush.msra.mxu0 %v362_v8  ;;  %760 = vmatpush.msra.mxu1 %v362_v8  ;;  %v323_v52 = vld [vmem:[#allocation2 + $0x58] sm:$0xff]  ;;  %v330_v56 = vld [vmem:[#allocation2 + $0x20] sm:$0xff]  ;;  %v334_v61 = vld [vmem:[#allocation2 + $0x70] sm:$0xff] }
  0x2f   : > { %761 = vmatpush.msra.mxu2 %v362_v8  ;;  %762 = vmatpush.msra.mxu3 %v362_v8  ;;  %v324_v1 = vld [vmem:[#allocation2 + $0x18] sm:$0xff]  ;;  %v328_v2 = vld [vmem:[#allocation2 + $0x48] sm:$0xff]  ;;  %v331_v8 = vld [vmem:[#allocation2 + $0x10] sm:$0xff] }
  0x30   : > { %376 = vmatpush.msra.mxu0 %v361_v9  ;;  %763 = vmatpush.msra.mxu1 %v361_v9 }
  0x31   : > { %764 = vmatpush.msra.mxu2 %v361_v9  ;;  %765 = vmatpush.msra.mxu3 %v361_v9 }
  0x32   : > { %377 = vmatpush.msra.mxu0 %v360_v10  ;;  %766 = vmatpush.msra.mxu1 %v360_v10 }
  0x33   : > { %767 = vmatpush.msra.mxu2 %v360_v10  ;;  %768 = vmatpush.msra.mxu3 %v360_v10 }
  0x34   : > { %378 = vmatpush.msra.mxu0 %v359_v11  ;;  %769 = vmatpush.msra.mxu1 %v359_v11 }
  0x35   : > { %770 = vmatpush.msra.mxu2 %v359_v11  ;;  %771 = vmatpush.msra.mxu3 %v359_v11 }
  0x36   : > { %379 = vmatpush.msra.mxu0 %v358_v12  ;;  %772 = vmatpush.msra.mxu1 %v358_v12 }
  0x37   : > { %773 = vmatpush.msra.mxu2 %v358_v12  ;;  %774 = vmatpush.msra.mxu3 %v358_v12 }
  0x38   : > { %380 = vmatpush.msra.mxu0 %v357_v13  ;;  %775 = vmatpush.msra.mxu1 %v357_v13 }
  0x39   : > { %776 = vmatpush.msra.mxu2 %v357_v13  ;;  %777 = vmatpush.msra.mxu3 %v357_v13 }
  0x3a   : > { %381 = vmatpush.msra.mxu0 %v356_v14  ;;  %778 = vmatpush.msra.mxu1 %v356_v14 }
  0x3b   : > { %779 = vmatpush.msra.mxu2 %v356_v14  ;;  %780 = vmatpush.msra.mxu3 %v356_v14 }
  0x3c   : > { %382 = vmatpush.msra.mxu0 %v355_v15  ;;  %781 = vmatpush.msra.mxu1 %v355_v15 }
  0x3d   : > { %782 = vmatpush.msra.mxu2 %v355_v15  ;;  %783 = vmatpush.msra.mxu3 %v355_v15  ;;  %v335_v15 = vld [vmem:[#allocation2 + $0x78] sm:$0xff] }
  0x3e   : > { %383 = vmatpush.msra.mxu0 %v354_v16  ;;  %784 = vmatpush.msra.mxu1 %v354_v16 }
  0x3f   : > { %785 = vmatpush.msra.mxu2 %v354_v16  ;;  %786 = vmatpush.msra.mxu3 %v354_v16 }
  0x40   : > { %384 = vmatpush.msra.mxu0 %v353_v17  ;;  %787 = vmatpush.msra.mxu1 %v353_v17 }
  0x41   : > { %385 = vmatmul.f32.vlgmr.msra.gmra.mxu0 %v337_v18  ;;  %397 = vmatmul.f32.vlgmr.msra.gmra.mxu1 %v341_v19 }
  0x42   : > { %788 = vmatpush.msra.mxu2 %v353_v17  ;;  %789 = vmatpush.msra.mxu3 %v353_v17 }
  0x43   : > { %409 = vmatmul.f32.vlgmr.msra.gmra.mxu2 %v345_v20  ;;  %421 = vmatmul.f32.vlgmr.msra.gmra.mxu3 %v349_v21 }
  0x49   : > { %388 = vmatmul.f32.gmra.mxu0 %v338_v22  ;;  %400 = vmatmul.f32.gmra.mxu1 %v342_v23 }
  0x4b   : > { %412 = vmatmul.f32.gmra.mxu2 %v346_v24  ;;  %424 = vmatmul.f32.gmra.mxu3 %v350_v25 }
  0x51   : > { %391 = vmatmul.f32.gmra.mxu0 %v339_v26  ;;  %403 = vmatmul.f32.gmra.mxu1 %v343_v27  ;;  %v332_v27 = vld [vmem:[#allocation2 + $0x38] sm:$0xff] }
  0x53   : > { %415 = vmatmul.f32.gmra.mxu2 %v347_v28  ;;  %427 = vmatmul.f32.gmra.mxu3 %v351_v29  ;;  %v336_v28 = vld [vmem:[#allocation2 + $0x28] sm:$0xff] }
  0x59   : > { %394 = vmatmul.f32.gmra.mxu0 %v340_v30  ;;  %406 = vmatmul.f32.gmra.mxu1 %v344_v31 }
  0x5b   : > { %418 = vmatmul.f32.gmra.mxu2 %v348_v32  ;;  %430 = vmatmul.f32.gmra.mxu3 %v352_v33 }
  0xbe   : > { %v386_v36 = vpop.f32.mrf.mxu0  ;;  %v398_v37 = vpop.f32.mrf.mxu1 }
  0xbf   : > { %v434_v38 = vadd.f32 %v386_v36, %v321_v34  ;;  %v1021_v39 = vadd.f32 %v398_v37, %v325_v35 }
  0xc1   : > { %450 = vst [vmem:[#allocation2 + $0x30] sm:$0xff] %v434_v38  ;;  %v526_v3 = vmul.f32 %v434_v38, %v434_v38  ;;  %v530_v20 = vmul.f32 %v1021_v39, %v1021_v39 }
  0xc2   : > { %485 = vst [vmem:[%s951_s11] sm:$0xff] %v434_v38 }
  0xc3   : > { %454 = vst [vmem:[#allocation2 + $0x50] sm:$0xff] %v1021_v39 }
  0xc4   : > { %489 = vst [vmem:[%s951_s11 + $0x20] sm:$0xff] %v1021_v39 }
  0xc6   : > { %v389_v42 = vpop.f32.mrf.mxu0  ;;  %v401_v43 = vpop.f32.mrf.mxu1 }
  0xc7   : > { %v435_v45 = vadd.f32 %v389_v42, %v322_v40  ;;  %v1027_v46 = vadd.f32 %v401_v43, %v326_v41  ;;  %v410_v47 = vpop.f32.mrf.mxu2  ;;  %v422_v48 = vpop.f32.mrf.mxu3 }
  0xc8   : > { %v1029_v50 = vadd.f32 %v410_v47, %v329_v44  ;;  %v1033_v51 = vadd.f32 %v422_v48, %v333_v49 }
  0xc9   : > { %451 = vst [vmem:[#allocation2] sm:$0xff] %v435_v45  ;;  %v527_v63 = vmul.f32 %v435_v45, %v435_v45  ;;  %v502_v4 = vadd.f32 %v435_v45, %v434_v38  ;;  %v531_v24 = vmul.f32 %v1027_v46, %v1027_v46 }
  0xca   : > { %486 = vst [vmem:[%s951_s11 + $0x8] sm:$0xff] %v435_v45 }
  0xcb   : > { %455 = vst [vmem:[#allocation2 + $0x68] sm:$0xff] %v1027_v46  ;;  %v542_v9 = vadd.f32 %v527_v63, %v526_v3 }
  0xcc   : > { %490 = vst [vmem:[%s951_s11 + $0x28] sm:$0xff] %v1027_v46 }
  0xcd   : > { %458 = vst [vmem:[#allocation2 + $0x40] sm:$0xff] %v1029_v50 }
  0xce   : > { %v392_v54 = vpop.f32.mrf.mxu0  ;;  %493 = vst [vmem:[%s951_s11 + $0x40] sm:$0xff] %v1029_v50  ;;  %v404_v55 = vpop.f32.mrf.mxu1 }
  0xcf   : > { %v436_v57 = vadd.f32 %v392_v54, %v323_v52  ;;  %v440_v58 = vadd.f32 %v404_v55, %v327_v53  ;;  %v413_v59 = vpop.f32.mrf.mxu2  ;;  %462 = vst [vmem:[#allocation2 + $0x60] sm:$0xff] %v1033_v51  ;;  %v425_v60 = vpop.f32.mrf.mxu3  ;;  %v538_v53 = vmul.f32 %v1033_v51, %v1033_v51 }
  0xd0   : > { %497 = vst [vmem:[%s951_s11 + $0x60] sm:$0xff] %v1033_v51  ;;  %v1043_v62 = vadd.f32 %v413_v59, %v330_v56  ;;  %v1046_v0 = vadd.f32 %v425_v60, %v334_v61 }
  0xd1   : > { %452 = vst [vmem:[#allocation2 + $0x58] sm:$0xff] %v436_v57  ;;  %v528_v5 = vmul.f32 %v436_v57, %v436_v57  ;;  %v503_v10 = vadd.f32 %v502_v4, %v436_v57  ;;  %v532_v30 = vmul.f32 %v440_v58, %v440_v58 }
  0xd2   : > { %487 = vst [vmem:[%s951_s11 + $0x10] sm:$0xff] %v436_v57  ;;  %v535_v42 = vmul.f32 %v1043_v62, %v1043_v62  ;;  %v539_v55 = vmul.f32 %v1046_v0, %v1046_v0 }
  0xd3   : > { %456 = vst [vmem:[#allocation2 + $0x8] sm:$0xff] %v440_v58  ;;  %v543_v16 = vadd.f32 %v542_v9, %v528_v5  ;;  %v501_v9 = vld [vmem:[%s936_s26] sm:$0x1] }
  0xd4   : > { %491 = vst [vmem:[%s951_s11 + $0x30] sm:$0xff] %v440_v58 }
  0xd5   : > { %459 = vst [vmem:[#allocation2 + $0x20] sm:$0xff] %v1043_v62 }
  0xd6   : > { %v395_v6 = vpop.f32.mrf.mxu0  ;;  %494 = vst [vmem:[%s951_s11 + $0x48] sm:$0xff] %v1043_v62  ;;  %v407_v7 = vpop.f32.mrf.mxu1 }
  0xd7   : > { %v437_v11 = vadd.f32 %v395_v6, %v324_v1  ;;  %v441_v12 = vadd.f32 %v407_v7, %v328_v2  ;;  %v416_v13 = vpop.f32.mrf.mxu2  ;;  %463 = vst [vmem:[#allocation2 + $0x70] sm:$0xff] %v1046_v0  ;;  %v428_v14 = vpop.f32.mrf.mxu3 }
  0xd8   : > { %498 = vst [vmem:[%s951_s11 + $0x68] sm:$0xff] %v1046_v0  ;;  %v444_v19 = vadd.f32 %v416_v13, %v331_v8  ;;  %v448_v23 = vadd.f32 %v428_v14, %v335_v15 }
  0xd9   : > { %453 = vst [vmem:[#allocation2 + $0x18] sm:$0xff] %v437_v11  ;;  %v504_v17 = vadd.f32 %v503_v10, %v437_v11  ;;  %v529_v18 = vmul.f32 %v437_v11, %v437_v11  ;;  %v533_v32 = vmul.f32 %v441_v12, %v441_v12 }
  0xda   : > { %488 = vst [vmem:[%s951_s11 + $0x18] sm:$0xff] %v437_v11  ;;  %v540_v59 = vmul.f32 %v448_v23, %v448_v23 }
  0xdb   : > { %v505_v21 = vadd.f32 %v504_v17, %v1021_v39  ;;  %v544_v22 = vadd.f32 %v543_v16, %v529_v18  ;;  %457 = vst [vmem:[#allocation2 + $0x48] sm:$0xff] %v441_v12  ;;  %v534_v39 = vmul.f32 %v1029_v50, %v1029_v50 }
  0xdc   : > { %492 = vst [vmem:[%s951_s11 + $0x38] sm:$0xff] %v441_v12 }
  0xdd   : > { %v545_v25 = vadd.f32 %v544_v22, %v530_v20  ;;  %v506_v26 = vadd.f32 %v505_v21, %v1027_v46  ;;  %460 = vst [vmem:[#allocation2 + $0x10] sm:$0xff] %v444_v19  ;;  %v536_v46 = vmul.f32 %v444_v19, %v444_v19 }
  0xde   : > { %495 = vst [vmem:[%s951_s11 + $0x50] sm:$0xff] %v444_v19 }
  0xdf   : > { %v507_v29 = vadd.f32 %v506_v26, %v440_v58  ;;  %v546_v31 = vadd.f32 %v545_v25, %v531_v24  ;;  %v419_v33 = vpop.f32.mrf.mxu2  ;;  %464 = vst [vmem:[#allocation2 + $0x78] sm:$0xff] %v448_v23  ;;  %v431_v34 = vpop.f32.mrf.mxu3 }
  0xe0   : > { %v445_v35 = vadd.f32 %v419_v33, %v332_v27  ;;  %499 = vst [vmem:[%s951_s11 + $0x70] sm:$0xff] %v448_v23  ;;  %v449_v36 = vadd.f32 %v431_v34, %v336_v28 }
  0xe1   : > { %v547_v37 = vadd.f32 %v546_v31, %v532_v30  ;;  %v508_v38 = vadd.f32 %v507_v29, %v441_v12  ;;  %v525_v12 = vld [vmem:[%s941_s30] sm:$0x1] }
  0xe2   : > { %461 = vst [vmem:[#allocation2 + $0x38] sm:$0xff] %v445_v35  ;;  %v537_v48 = vmul.f32 %v445_v35, %v445_v35  ;;  %v541_v61 = vmul.f32 %v449_v36, %v449_v36 }
  0xe3   : > { %v509_v40 = vadd.f32 %v508_v38, %v1029_v50  ;;  %v548_v41 = vadd.f32 %v547_v37, %v533_v32  ;;  %496 = vst [vmem:[%s951_s11 + $0x58] sm:$0xff] %v445_v35 }
  0xe4   : > { %465 = vst [vmem:[#allocation2 + $0x28] sm:$0xff] %v449_v36 }
  0xe5   : > { %v549_v43 = vadd.f32 %v548_v41, %v534_v39  ;;  %v510_v44 = vadd.f32 %v509_v40, %v1043_v62  ;;  %500 = vst [vmem:[%s951_s11 + $0x78] sm:$0xff] %v449_v36 }
  0xe7   : > { %v511_v45 = vadd.f32 %v510_v44, %v444_v19  ;;  %v550_v47 = vadd.f32 %v549_v43, %v535_v42 }
  0xe9   : > { %v551_v49 = vadd.f32 %v550_v47, %v536_v46  ;;  %v512_v52 = vadd.f32 %v511_v45, %v445_v35 }
  0xeb   : > { %v513_v50 = vadd.f32 %v512_v52, %v1033_v51  ;;  %v552_v54 = vadd.f32 %v551_v49, %v537_v48 }
  0xed   : > { %v553_v56 = vadd.f32 %v552_v54, %v538_v53  ;;  %v514_v57 = vadd.f32 %v513_v50, %v1046_v0 }
  0xef   : > { %v515_v58 = vadd.f32 %v514_v57, %v448_v23  ;;  %v554_v60 = vadd.f32 %v553_v56, %v539_v55 }
  0xf1   : > { %v555_v62 = vadd.f32 %v554_v60, %v540_v59  ;;  %v516_v63 = vadd.f32 %v515_v58, %v449_v36 }
  0xf3   : > { %v517_v1 = vrot.slane %v516_v63, 4  ;;  %v556_v2 = vadd.f32 %v555_v62, %v541_v61 }
  0xf5   : > { %v518_v3 = vadd.f32 %v517_v1, %v516_v63  ;;  %v557_v51 = vrot.slane %v556_v2, 4 }
  0xf7   : > { %v519_v4 = vrot.slane %v518_v3, 2  ;;  %v558_v5 = vadd.f32 %v557_v51, %v556_v2 }
  0xf9   : > { %v520_v6 = vadd.f32 %v519_v4, %v518_v3  ;;  %v559_v7 = vrot.slane %v558_v5, 2 }
  0xfb   : > { %v521_v8 = vrot.slane %v520_v6, 1  ;;  %v560_v0 = vadd.f32 %v559_v7, %v558_v5 }
  0xfd   : > { %v522_v10 = vadd.f32 %v521_v8, %v520_v6  ;;  %v561_v11 = vrot.slane %v560_v0, 1 }
  0xff   : > { %v523_v13 = vadd.f32 %v522_v10, %v501_v9  ;;  %v562_v14 = vadd.f32 %v561_v11, %v560_v0 }
 0x101   : > { %524 = vst [vmem:[%s936_s26] sm:$0x1] %v523_v13  ;;  %v563_v15 = vadd.f32 %v562_v14, %v525_v12 }
 0x103   : > { %564 = vst [vmem:[%s941_s30] sm:$0x1] %v563_v15 }
 0x104 PF: > { %s15_s19 = sadd.s32 1, %s870_s19   ;;  %s1103_s15 = smov %s862_s17 }
 0x105   : > { %p12_p8 = scmp.ge.s32.totalorder %s15_s19, 6   ;;  %s1104_s16 = smov %s866_s18 }
 0x106   : > { %s1105_s17 = smov %s1108_s20  ;;  %s1106_s18 = smov %s1112_s21 }
 0x107   :  { %14 = sbr.rel (!%p12_p8) target bundleno = 3 (0x3), region = 97 }

</bundles_post_ra>
